<compile_context>
chip_gen: v7x
topology: tpu7x:2x2x1
jax: 0.10.0
libtpu: 0.0.40
codegen_flags: <defaults>
</compile_context>

<pallas_src>
import functools

import jax
import jax.numpy as jnp
import numpy as np
from jax.experimental import pallas as pl
from jax.experimental.pallas import tpu as pltpu


def _model_plus_kernel(x_ref, scale_ref, shift_ref, w2_ref, cbias_ref,
                       fcwt_ref, fcb_ref, out_ref, rhs_ref, *, H, W, Cp):
    # Per grid step (one image):
    #   x_ref     (C, Lx)     zero-padded, flattened image (Wp-stride rows + 1 slack row), f32
    #   scale_ref (C, 1)      1/std
    #   shift_ref (C, 1)      -mean/std
    #   w2_ref    (Cout, 9*Cp) conv weight, tap-major columns, bf16 (padded channel cols = 0)
    #   cbias_ref (Cout, 1)
    #   fcwt_ref  (Cout, NC)
    #   fcb_ref   (1, NC)
    #   out_ref   (1, NC)     logits row for this image
    #   rhs_ref   (9*Cp, Lw)  bf16 VMEM scratch for the stacked conv RHS
    C, Lx = x_ref.shape
    Lw = rhs_ref.shape[1]
    Wp = W + 2
    inv_wp = 1.0 / float(Wp)

    # Interior-pixel mask over the padded flattened image, built in-kernel (no HBM constant).
    # row/col via float floor-divide; exact because lane+0.5 keeps us > 1e-3 away from integers.
    lane = jax.lax.broadcasted_iota(jnp.int32, (1, Lx), 1).astype(jnp.float32)
    row = jnp.floor((lane + 0.5) * inv_wp)
    col = lane - row * float(Wp)
    in_mask = ((row >= 1.0) & (row <= float(H)) &
               (col >= 1.0) & (col <= float(W))).astype(jnp.float32)      # (1, Lx)

    # input_net: per-channel affine normalization (f32 VPU); padding lanes re-zeroed;
    # channel rows padded to Cp (bf16 sublane tile); single cast to bf16.
    xn = (x_ref[...] * scale_ref[...] + shift_ref[...]) * in_mask          # (C, Lx) f32
    if Cp > C:
        xn = jnp.concatenate(
            [xn, jnp.zeros((Cp - C, Lx), jnp.float32)], axis=0)            # (Cp, Lx)
    xnb = xn.astype(jnp.bfloat16)

    # net part 1: 3x3 "same" conv as ONE bf16 MXU matmul.  The 9 lane-shifted taps are
    # written straight into the bf16 RHS scratch (tile-aligned 16-row blocks, no f32 temp).
    for k in range(9):
        off = (k // 3) * Wp + (k % 3)
        rhs_ref[k * Cp:(k + 1) * Cp, :] = xnb[:, off:off + Lw]
    y = jnp.dot(w2_ref[...], rhs_ref[...],
                preferred_element_type=jnp.float32)                        # (Cout, Lw)

    # bias + ReLU, mask wrap-around columns, global average pool as an XLU lane reduction
    # (pool matrix eliminated; its mask is also generated in-kernel).
    lane_o = jax.lax.broadcasted_iota(jnp.int32, (1, Lw), 1).astype(jnp.float32)
    row_o = jnp.floor((lane_o + 0.5) * inv_wp)
    col_o = lane_o - row_o * float(Wp)
    pool_mask = (col_o < float(W)).astype(jnp.float32)                     # (1, Lw)
    r = jnp.maximum(y + cbias_ref[...], 0.0) * pool_mask                   # (Cout, Lw)
    pooled = jnp.sum(r, axis=1, keepdims=True) * (1.0 / float(H * W))      # (Cout, 1)

    # net part 2: classifier head (tiny: VPU multiply + sublane reduce)
    logits = jnp.sum(pooled * fcwt_ref[...], axis=0, keepdims=True) + fcb_ref[...]
    out_ref[...] = logits                                                  # (1, NC)


def model_plus_forward(x, mean, std, w, cbias, fcw, fcb):
    """x: (B, C, H, W) float32 NCHW. Returns logits (B, NC) float32."""
    B, C, H, W = x.shape
    Cout = w.shape[0]
    NC = fcw.shape[0]
    Wp = W + 2
    Lw = H * Wp                    # conv-output frame length (Wp stride per row)
    Lx = (H + 3) * Wp              # padded image + one extra zero row of slack for taps
    Cp = ((C + 15) // 16) * 16     # bf16 sublane tile for the 9-tap sublane stacking

    # --- minimal wrapper glue: a single zero-pad + free reshape (no transpose, no channel
    #     inflation in HBM; channel padding happens in-kernel) ---
    xp = jnp.pad(x, ((0, 0), (0, 0), (1, 2), (1, 1))).reshape(B, C, Lx)    # (B, C, Lx)

    scale = (1.0 / std).astype(jnp.float32).reshape(C, 1)
    shift = (-mean / std).astype(jnp.float32).reshape(C, 1)

    # conv weight: (Cout, C, 3, 3) -> tap-major columns (Cout, 9*Cp), zero padded channels, bf16
    w_pad = jnp.pad(w.astype(jnp.float32), ((0, 0), (0, Cp - C), (0, 0), (0, 0)))
    w2 = jnp.transpose(w_pad, (0, 2, 3, 1)).reshape(Cout, 9 * Cp).astype(jnp.bfloat16)

    cbias_c = cbias.reshape(Cout, 1).astype(jnp.float32)
    fcwt = jnp.transpose(fcw).astype(jnp.float32)                          # (Cout, NC)
    fcb_r = fcb.reshape(1, NC).astype(jnp.float32)

    kernel = functools.partial(_model_plus_kernel, H=H, W=W, Cp=Cp)

    # Explicit VMEM budget (double-buffered inputs + bf16 RHS scratch + intermediates),
    # with 4x headroom, capped below v7x's 64 MiB physical VMEM.
    vmem_est = (2 * C * Lx * 4                      # x block (double buffered)
                + 9 * Cp * Lw * 2                   # bf16 RHS scratch
                + Cp * Lx * 2 + C * Lx * 4          # xnb / xn temps
                + 2 * Cout * Lw * 4                 # y, r
                + 2 * (Cout * 9 * Cp * 2 + Cout * NC * 4 + 2 * C * 4 + Cout * 4 + NC * 4))
    vmem_limit = int(min(64 * 2**20, max(8 * 2**20, 4 * vmem_est)))

    out = pl.pallas_call(
        kernel,
        out_shape=jax.ShapeDtypeStruct((B, 1, NC), jnp.float32),
        grid_spec=pltpu.PrefetchScalarGridSpec(
            num_scalar_prefetch=0,
            grid=(B,),                                                     # >=2 steps for B>=2
            in_specs=[
                pl.BlockSpec((None, C, Lx), lambda b: (b, 0, 0)),          # one image / step
                pl.BlockSpec((C, 1), lambda b: (0, 0)),                    # scale
                pl.BlockSpec((C, 1), lambda b: (0, 0)),                    # shift
                pl.BlockSpec((Cout, 9 * Cp), lambda b: (0, 0)),            # conv weight (bf16)
                pl.BlockSpec((Cout, 1), lambda b: (0, 0)),                 # conv bias
                pl.BlockSpec((Cout, NC), lambda b: (0, 0)),                # fc weight^T
                pl.BlockSpec((1, NC), lambda b: (0, 0)),                   # fc bias
            ],
            out_specs=pl.BlockSpec((None, 1, NC), lambda b: (b, 0, 0)),    # per-image row
            scratch_shapes=[pltpu.VMEM((9 * Cp, Lw), jnp.bfloat16)],       # staged conv RHS
        ),
        compiler_params=pltpu.CompilerParams(
            dimension_semantics=("parallel",),                             # megacore-safe
            vmem_limit_bytes=vmem_limit),
    )(xp, scale, shift, w2, cbias_c, fcwt, fcb_r)

    return out.reshape(B, NC)


def reference(x, mean, std, w, cbias, fcw, fcb):
    """Pure-JAX reference matching the PyTorch semantics."""
    xn = (x - mean.reshape(1, -1, 1, 1)) / std.reshape(1, -1, 1, 1)
    y = jax.lax.conv_general_dilated(
        xn, w, window_strides=(1, 1), padding="SAME",
        dimension_numbers=("NCHW", "OIHW", "NCHW"))
    y = jnp.maximum(y + cbias.reshape(1, -1, 1, 1), 0.0)
    pooled = jnp.mean(y, axis=(2, 3))
    return pooled @ fcw.T + fcb


if __name__ == "__main__":
    B, C, H, W = 2, 4, 16, 16
    Cout, NC = 8, 10

    key = jax.random.PRNGKey(0)
    kx, kw, kb, kfw, kfb = jax.random.split(key, 5)

    x = jax.random.normal(kx, (B, C, H, W), jnp.float32)

    # deterministic synthetic parameters (no checkpoint loading)
    mean = jnp.linspace(-0.2, 0.2, C).astype(jnp.float32)
    std = jnp.linspace(0.5, 1.5, C).astype(jnp.float32)
    w = 0.1 * jax.random.normal(kw, (Cout, C, 3, 3), jnp.float32)
    cbias = 0.05 * jax.random.normal(kb, (Cout,), jnp.float32)
    fcw = 0.1 * jax.random.normal(kfw, (NC, Cout), jnp.float32)
    fcb = 0.05 * jax.random.normal(kfb, (NC,), jnp.float32)

    out = model_plus_forward(x, mean, std, w, cbias, fcw, fcb)
    out = jax.block_until_ready(out)

    ref = jax.block_until_ready(reference(x, mean, std, w, cbias, fcw, fcb))
    assert out.shape == (B, NC), out.shape
    if not np.allclose(np.asarray(out), np.asarray(ref), rtol=5e-2, atol=5e-2):
        raise AssertionError(
            f"mismatch: max abs diff = {np.max(np.abs(np.asarray(out) - np.asarray(ref)))}")

    print("KERNEL_OK")
</pallas_src>

<mosaic_0001>
module attributes {stable_mosaic.version = 11 : i64} {
  func.func @_model_plus_kernel(%arg0: i32, %arg1: memref<1x4x342xf32, #tpu.memory_space<vmem>>, %arg2: memref<4x1xf32, #tpu.memory_space<vmem>>, %arg3: memref<4x1xf32, #tpu.memory_space<vmem>>, %arg4: memref<8x144xbf16, #tpu.memory_space<vmem>>, %arg5: memref<8x1xf32, #tpu.memory_space<vmem>>, %arg6: memref<8x10xf32, #tpu.memory_space<vmem>>, %arg7: memref<1x10xf32, #tpu.memory_space<vmem>>, %arg8: memref<1x1x10xf32, #tpu.memory_space<vmem>>, %arg9: memref<144x288xbf16, #tpu.memory_space<vmem>>) attributes {dimension_semantics = [#tpu.dimension_semantics<parallel>], iteration_bounds = array<i64: 2>, scalar_prefetch = 0 : i64, scratch_operands = 1 : i64, tpu.core_type = #tpu.core_type<tc>, window_params = [{transform_indices = @transform_0, window_bounds = array<i64: 1, 4, 342>}, {pipeline_mode = #tpu.pipeline_mode<synchronous>, transform_indices = @transform_1, window_bounds = array<i64: 4, 1>}, {pipeline_mode = #tpu.pipeline_mode<synchronous>, transform_indices = @transform_2, window_bounds = array<i64: 4, 1>}, {pipeline_mode = #tpu.pipeline_mode<synchronous>, transform_indices = @transform_3, window_bounds = array<i64: 8, 144>}, {pipeline_mode = #tpu.pipeline_mode<synchronous>, transform_indices = @transform_4, window_bounds = array<i64: 8, 1>}, {pipeline_mode = #tpu.pipeline_mode<synchronous>, transform_indices = @transform_5, window_bounds = array<i64: 8, 10>}, {pipeline_mode = #tpu.pipeline_mode<synchronous>, transform_indices = @transform_6, window_bounds = array<i64: 1, 10>}, {transform_indices = @transform_7, window_bounds = array<i64: 1, 1, 10>}]} {
    %0 = tpu.iota {dimensions = array<i32: 1>} : vector<1x342xi32>
    %1 = arith.sitofp %0 : vector<1x342xi32> to vector<1x342xf32>
    %cst = arith.constant 5.000000e-01 : f32
    %2 = vector.broadcast %cst : f32 to vector<1x342xf32>
    %3 = arith.addf %1, %2 : vector<1x342xf32>
    %cst_0 = arith.constant 0.055555556 : f32
    %4 = vector.broadcast %cst_0 : f32 to vector<1x342xf32>
    %5 = arith.mulf %3, %4 : vector<1x342xf32>
    %6 = math.floor %5 : vector<1x342xf32>
    %cst_1 = arith.constant 1.800000e+01 : f32
    %7 = vector.broadcast %cst_1 : f32 to vector<1x342xf32>
    %8 = arith.mulf %6, %7 : vector<1x342xf32>
    %9 = arith.subf %1, %8 : vector<1x342xf32>
    %cst_2 = arith.constant 1.000000e+00 : f32
    %10 = vector.broadcast %cst_2 : f32 to vector<1x342xf32>
    %11 = arith.cmpf oge, %6, %10 : vector<1x342xf32>
    %cst_3 = arith.constant 1.600000e+01 : f32
    %12 = vector.broadcast %cst_3 : f32 to vector<1x342xf32>
    %13 = arith.cmpf ole, %6, %12 : vector<1x342xf32>
    %14 = arith.andi %11, %13 : vector<1x342xi1>
    %cst_4 = arith.constant 1.000000e+00 : f32
    %15 = vector.broadcast %cst_4 : f32 to vector<1x342xf32>
    %16 = arith.cmpf oge, %9, %15 : vector<1x342xf32>
    %17 = arith.andi %14, %16 : vector<1x342xi1>
    %cst_5 = arith.constant 1.600000e+01 : f32
    %18 = vector.broadcast %cst_5 : f32 to vector<1x342xf32>
    %19 = arith.cmpf ole, %9, %18 : vector<1x342xf32>
    %20 = arith.andi %17, %19 : vector<1x342xi1>
    %21 = arith.extui %20 : vector<1x342xi1> to vector<1x342xi32>
    %22 = arith.sitofp %21 : vector<1x342xi32> to vector<1x342xf32>
    %c0 = arith.constant 0 : index
    %c0_6 = arith.constant 0 : index
    %c0_7 = arith.constant 0 : index
    %23 = vector.load %arg1[%c0, %c0_6, %c0_7] : memref<1x4x342xf32, #tpu.memory_space<vmem>>, vector<1x4x342xf32>
    %24 = vector.shape_cast %23 : vector<1x4x342xf32> to vector<4x342xf32>
    %c0_8 = arith.constant 0 : index
    %c0_9 = arith.constant 0 : index
    %25 = vector.load %arg2[%c0_8, %c0_9] : memref<4x1xf32, #tpu.memory_space<vmem>>, vector<4x1xf32>
    %26 = vector.broadcast %25 : vector<4x1xf32> to vector<4x342xf32>
    %27 = arith.mulf %24, %26 : vector<4x342xf32>
    %c0_10 = arith.constant 0 : index
    %c0_11 = arith.constant 0 : index
    %28 = vector.load %arg3[%c0_10, %c0_11] : memref<4x1xf32, #tpu.memory_space<vmem>>, vector<4x1xf32>
    %29 = vector.broadcast %28 : vector<4x1xf32> to vector<4x342xf32>
    %30 = arith.addf %27, %29 : vector<4x342xf32>
    %31 = vector.broadcast %22 : vector<1x342xf32> to vector<4x342xf32>
    %32 = arith.mulf %30, %31 : vector<4x342xf32>
    %cst_12 = arith.constant 0.000000e+00 : f32
    %33 = vector.broadcast %cst_12 : f32 to vector<12x342xf32>
    %34 = tpu.concatenate %32, %33 in 0 : vector<4x342xf32>, vector<12x342xf32> -> vector<16x342xf32>
    %35 = arith.truncf %34 : vector<16x342xf32> to vector<16x342xbf16>
    %36 = vector.extract_strided_slice %35 {offsets = [0, 0], sizes = [16, 288], strides = [1, 1]} : vector<16x342xbf16> to vector<16x288xbf16>
    %c0_13 = arith.constant 0 : index
    %c0_14 = arith.constant 0 : index
    %37 = vector.load %arg9[%c0_13, %c0_14] : memref<144x288xbf16, #tpu.memory_space<vmem>>, vector<16x288xbf16>
    tpu.vector_store %arg9[%c0_13, %c0_14], %36 {strides = array<i32>} : memref<144x288xbf16, #tpu.memory_space<vmem>>, vector<16x288xbf16>,
    %38 = vector.extract_strided_slice %35 {offsets = [0, 1], sizes = [16, 288], strides = [1, 1]} : vector<16x342xbf16> to vector<16x288xbf16>
    %c16 = arith.constant 16 : index
    %c0_15 = arith.constant 0 : index
    %39 = vector.load %arg9[%c16, %c0_15] : memref<144x288xbf16, #tpu.memory_space<vmem>>, vector<16x288xbf16>
    tpu.vector_store %arg9[%c16, %c0_15], %38 {strides = array<i32>} : memref<144x288xbf16, #tpu.memory_space<vmem>>, vector<16x288xbf16>,
    %40 = vector.extract_strided_slice %35 {offsets = [0, 2], sizes = [16, 288], strides = [1, 1]} : vector<16x342xbf16> to vector<16x288xbf16>
    %c32 = arith.constant 32 : index
    %c0_16 = arith.constant 0 : index
    %41 = vector.load %arg9[%c32, %c0_16] : memref<144x288xbf16, #tpu.memory_space<vmem>>, vector<16x288xbf16>
    tpu.vector_store %arg9[%c32, %c0_16], %40 {strides = array<i32>} : memref<144x288xbf16, #tpu.memory_space<vmem>>, vector<16x288xbf16>,
    %42 = vector.extract_strided_slice %35 {offsets = [0, 18], sizes = [16, 288], strides = [1, 1]} : vector<16x342xbf16> to vector<16x288xbf16>
    %c48 = arith.constant 48 : index
    %c0_17 = arith.constant 0 : index
    %43 = vector.load %arg9[%c48, %c0_17] : memref<144x288xbf16, #tpu.memory_space<vmem>>, vector<16x288xbf16>
    tpu.vector_store %arg9[%c48, %c0_17], %42 {strides = array<i32>} : memref<144x288xbf16, #tpu.memory_space<vmem>>, vector<16x288xbf16>,
    %44 = vector.extract_strided_slice %35 {offsets = [0, 19], sizes = [16, 288], strides = [1, 1]} : vector<16x342xbf16> to vector<16x288xbf16>
    %c64 = arith.constant 64 : index
    %c0_18 = arith.constant 0 : index
    %45 = vector.load %arg9[%c64, %c0_18] : memref<144x288xbf16, #tpu.memory_space<vmem>>, vector<16x288xbf16>
    tpu.vector_store %arg9[%c64, %c0_18], %44 {strides = array<i32>} : memref<144x288xbf16, #tpu.memory_space<vmem>>, vector<16x288xbf16>,
    %46 = vector.extract_strided_slice %35 {offsets = [0, 20], sizes = [16, 288], strides = [1, 1]} : vector<16x342xbf16> to vector<16x288xbf16>
    %c80 = arith.constant 80 : index
    %c0_19 = arith.constant 0 : index
    %47 = vector.load %arg9[%c80, %c0_19] : memref<144x288xbf16, #tpu.memory_space<vmem>>, vector<16x288xbf16>
    tpu.vector_store %arg9[%c80, %c0_19], %46 {strides = array<i32>} : memref<144x288xbf16, #tpu.memory_space<vmem>>, vector<16x288xbf16>,
    %48 = vector.extract_strided_slice %35 {offsets = [0, 36], sizes = [16, 288], strides = [1, 1]} : vector<16x342xbf16> to vector<16x288xbf16>
    %c96 = arith.constant 96 : index
    %c0_20 = arith.constant 0 : index
    %49 = vector.load %arg9[%c96, %c0_20] : memref<144x288xbf16, #tpu.memory_space<vmem>>, vector<16x288xbf16>
    tpu.vector_store %arg9[%c96, %c0_20], %48 {strides = array<i32>} : memref<144x288xbf16, #tpu.memory_space<vmem>>, vector<16x288xbf16>,
    %50 = vector.extract_strided_slice %35 {offsets = [0, 37], sizes = [16, 288], strides = [1, 1]} : vector<16x342xbf16> to vector<16x288xbf16>
    %c112 = arith.constant 112 : index
    %c0_21 = arith.constant 0 : index
    %51 = vector.load %arg9[%c112, %c0_21] : memref<144x288xbf16, #tpu.memory_space<vmem>>, vector<16x288xbf16>
    tpu.vector_store %arg9[%c112, %c0_21], %50 {strides = array<i32>} : memref<144x288xbf16, #tpu.memory_space<vmem>>, vector<16x288xbf16>,
    %52 = vector.extract_strided_slice %35 {offsets = [0, 38], sizes = [16, 288], strides = [1, 1]} : vector<16x342xbf16> to vector<16x288xbf16>
    %c128 = arith.constant 128 : index
    %c0_22 = arith.constant 0 : index
    %53 = vector.load %arg9[%c128, %c0_22] : memref<144x288xbf16, #tpu.memory_space<vmem>>, vector<16x288xbf16>
    tpu.vector_store %arg9[%c128, %c0_22], %52 {strides = array<i32>} : memref<144x288xbf16, #tpu.memory_space<vmem>>, vector<16x288xbf16>,
    %c0_23 = arith.constant 0 : index
    %c0_24 = arith.constant 0 : index
    %54 = vector.load %arg4[%c0_23, %c0_24] : memref<8x144xbf16, #tpu.memory_space<vmem>>, vector<8x144xbf16>
    %c0_25 = arith.constant 0 : index
    %c0_26 = arith.constant 0 : index
    %55 = vector.load %arg9[%c0_25, %c0_26] : memref<144x288xbf16, #tpu.memory_space<vmem>>, vector<144x288xbf16>
    %cst_27 = arith.constant dense<0.000000e+00> : vector<8x288xf32>
    %56 = tpu.matmul %54, %55, %cst_27 {dimension_numbers = #tpu.dot_dimension_numbers<[1], [0], [0], [1], [0, 0, 1, 1], [], []>} : vector<8x144xbf16>, vector<144x288xbf16>, vector<8x288xf32> -> vector<8x288xf32>
    %57 = tpu.iota {dimensions = array<i32: 1>} : vector<1x288xi32>
    %58 = arith.sitofp %57 : vector<1x288xi32> to vector<1x288xf32>
    %cst_28 = arith.constant 5.000000e-01 : f32
    %59 = vector.broadcast %cst_28 : f32 to vector<1x288xf32>
    %60 = arith.addf %58, %59 : vector<1x288xf32>
    %cst_29 = arith.constant 0.055555556 : f32
    %61 = vector.broadcast %cst_29 : f32 to vector<1x288xf32>
    %62 = arith.mulf %60, %61 : vector<1x288xf32>
    %63 = math.floor %62 : vector<1x288xf32>
    %cst_30 = arith.constant 1.800000e+01 : f32
    %64 = vector.broadcast %cst_30 : f32 to vector<1x288xf32>
    %65 = arith.mulf %63, %64 : vector<1x288xf32>
    %66 = arith.subf %58, %65 : vector<1x288xf32>
    %cst_31 = arith.constant 1.600000e+01 : f32
    %67 = vector.broadcast %cst_31 : f32 to vector<1x288xf32>
    %68 = arith.cmpf olt, %66, %67 : vector<1x288xf32>
    %69 = arith.extui %68 : vector<1x288xi1> to vector<1x288xi32>
    %70 = arith.sitofp %69 : vector<1x288xi32> to vector<1x288xf32>
    %c0_32 = arith.constant 0 : index
    %c0_33 = arith.constant 0 : index
    %71 = vector.load %arg5[%c0_32, %c0_33] : memref<8x1xf32, #tpu.memory_space<vmem>>, vector<8x1xf32>
    %72 = vector.broadcast %71 : vector<8x1xf32> to vector<8x288xf32>
    %73 = arith.addf %56, %72 : vector<8x288xf32>
    %cst_34 = arith.constant 0.000000e+00 : f32
    %74 = vector.broadcast %cst_34 : f32 to vector<8x288xf32>
    %75 = arith.maximumf %73, %74 : vector<8x288xf32>
    %76 = vector.broadcast %70 : vector<1x288xf32> to vector<8x288xf32>
    %77 = arith.mulf %75, %76 : vector<8x288xf32>
    %cst_35 = arith.constant dense<0.000000e+00> : vector<8xf32>
    %78 = vector.multi_reduction <add>, %77, %cst_35 [1] : vector<8x288xf32> to vector<8xf32>
    %79 = vector.shape_cast %78 : vector<8xf32> to vector<8x1xf32>
    %cst_36 = arith.constant 3.906250e-03 : f32
    %80 = vector.broadcast %cst_36 : f32 to vector<8x1xf32>
    %81 = arith.mulf %79, %80 : vector<8x1xf32>
    %c0_37 = arith.constant 0 : index
    %c0_38 = arith.constant 0 : index
    %82 = vector.load %arg6[%c0_37, %c0_38] : memref<8x10xf32, #tpu.memory_space<vmem>>, vector<8x10xf32>
    %83 = vector.broadcast %81 : vector<8x1xf32> to vector<8x10xf32>
    %84 = arith.mulf %83, %82 : vector<8x10xf32>
    %cst_39 = arith.constant dense<0.000000e+00> : vector<10xf32>
    %85 = vector.multi_reduction <add>, %84, %cst_39 [0] : vector<8x10xf32> to vector<10xf32>
    %86 = vector.shape_cast %85 : vector<10xf32> to vector<1x10xf32>
    %c0_40 = arith.constant 0 : index
    %c0_41 = arith.constant 0 : index
    %87 = vector.load %arg7[%c0_40, %c0_41] : memref<1x10xf32, #tpu.memory_space<vmem>>, vector<1x10xf32>
    %88 = arith.addf %86, %87 : vector<1x10xf32>
    %c0_42 = arith.constant 0 : index
    %c0_43 = arith.constant 0 : index
    %c0_44 = arith.constant 0 : index
    %89 = vector.load %arg8[%c0_42, %c0_43, %c0_44] : memref<1x1x10xf32, #tpu.memory_space<vmem>>, vector<1x1x10xf32>
    %90 = vector.shape_cast %89 : vector<1x1x10xf32> to vector<1x10xf32>
    %91 = vector.shape_cast %88 : vector<1x10xf32> to vector<1x1x10xf32>
    tpu.vector_store %arg8[%c0_42, %c0_43, %c0_44], %91 {strides = array<i32>} : memref<1x1x10xf32, #tpu.memory_space<vmem>>, vector<1x1x10xf32>,
    return
  }
  func.func @transform_0(%arg0: i32) -> (i32, i32, i32) {
    %c0_i32 = arith.constant 0 : i32
    %c0_i32_0 = arith.constant 0 : i32
    %c0_i32_1 = arith.constant 0 : i32
    return %arg0, %c0_i32, %c0_i32_0 : i32, i32, i32
  }
  func.func @transform_1(%arg0: i32) -> (i32, i32) {
    %c0_i32 = arith.constant 0 : i32
    %c0_i32_0 = arith.constant 0 : i32
    %c0_i32_1 = arith.constant 0 : i32
    return %c0_i32, %c0_i32_0 : i32, i32
  }
  func.func @transform_2(%arg0: i32) -> (i32, i32) {
    %c0_i32 = arith.constant 0 : i32
    %c0_i32_0 = arith.constant 0 : i32
    %c0_i32_1 = arith.constant 0 : i32
    return %c0_i32, %c0_i32_0 : i32, i32
  }
  func.func @transform_3(%arg0: i32) -> (i32, i32) {
    %c0_i32 = arith.constant 0 : i32
    %c0_i32_0 = arith.constant 0 : i32
    %c0_i32_1 = arith.constant 0 : i32
    return %c0_i32, %c0_i32_0 : i32, i32
  }
  func.func @transform_4(%arg0: i32) -> (i32, i32) {
    %c0_i32 = arith.constant 0 : i32
    %c0_i32_0 = arith.constant 0 : i32
    %c0_i32_1 = arith.constant 0 : i32
    return %c0_i32, %c0_i32_0 : i32, i32
  }
  func.func @transform_5(%arg0: i32) -> (i32, i32) {
    %c0_i32 = arith.constant 0 : i32
    %c0_i32_0 = arith.constant 0 : i32
    %c0_i32_1 = arith.constant 0 : i32
    return %c0_i32, %c0_i32_0 : i32, i32
  }
  func.func @transform_6(%arg0: i32) -> (i32, i32) {
    %c0_i32 = arith.constant 0 : i32
    %c0_i32_0 = arith.constant 0 : i32
    %c0_i32_1 = arith.constant 0 : i32
    return %c0_i32, %c0_i32_0 : i32, i32
  }
  func.func @transform_7(%arg0: i32) -> (i32, i32, i32) {
    %c0_i32 = arith.constant 0 : i32
    %c0_i32_0 = arith.constant 0 : i32
    %c0_i32_1 = arith.constant 0 : i32
    return %arg0, %c0_i32, %c0_i32_0 : i32, i32, i32
  }
}

</mosaic_0001>

<bundles_post_ra>
// kernel: tpu_custom_call.1
= control target key start
LH: loop header
LB: loop body
LE: loop exit
PB: predicated region body
PF: predicated region fallthrough
CT: control target
= control target key end

     0   :  { %12 = vsyncpa [#allocation4], 0  ;;  %s1231_s0 = inlined_call_operand.hbm [shape: f32[2,4,342], index: 0, kind: input, shape index: {}]   ;;  %s1232_s1 = inlined_call_operand.vmem [shape: f32[4,1], index: 1, kind: input, shape index: {}]   ;;  %s1233_s2 = inlined_call_operand.vmem [shape: f32[4,1], index: 2, kind: input, shape index: {}]   ;;  %s1234_s3 = inlined_call_operand.vmem [shape: bf16[8,144], index: 3, kind: input, shape index: {}]   ;;  %s1235_s4 = inlined_call_operand.vmem [shape: f32[8,1], index: 4, kind: input, shape index: {}]   ;;  %s1236_s5 = inlined_call_operand.vmem [shape: f32[8,10], index: 5, kind: input, shape index: {}]   ;;  %s1237_s6 = inlined_call_operand.vmem [shape: f32[1,10], index: 6, kind: input, shape index: {}]   ;;  %s1238_s7 = inlined_call_operand.hbm [shape: f32[2,1,10], index: 7, kind: output, shape index: {}]  }
   0x1   :  { %14 = vsyncpa [#allocation4 + $0x1], 0 }
   0x2   :  { %15 = vsyncpa [#allocation5], 0 }
   0x3   :  { %17 = vsyncpa [#allocation5 + $0x1], 0  ;;  %s997_s24 = smov 0   ;;  %s999_s25 = smov 0  }
   0x4   :  { %s1001_s26 = smov 0   ;;  %s1003_s27 = smov 0  }
   0x5 LB: > { %s1018_s28 = sadd.s32 4294967295, %s941_s27   ;;  %s758_s29 = sadd.s32 4294967294, %s941_s27   ;;  %s941_s27 = sphi %s1003_s27, %s1252_s27   ;;  %s937_s26 = sphi %s1001_s26, %s1251_s26   ;;  %s933_s25 = sphi %s999_s25, %s1250_s25   ;;  %s929_s24 = sphi %s997_s24, %s1249_s24  }
   0x6   : > { %s1022_s30 = sadd.s32 1, %s941_s27   ;;  %s30_s8 = sadd.s32 1, %s937_s26 }
   0x7   : > { %s27_s9 = ssub.s32 %s941_s27, %s1022_s30  ;;  %p37_p0 = scmp.ne.s32.totalorder %s937_s26, %s933_s25 }
   0x8   : > { %p28_p1 = scmp.eq.s32.totalorder %s27_s9, 0  ;;  %p38_p2 = scmp.eq.s32.totalorder %s941_s27, 0 }
   0x9   : > { %p43_p3 = scmp.ne.s32.totalorder %s933_s25, %s929_s24  ;;  %p44_p4 = scmp.eq.s32.totalorder %s1018_s28, 0 }
   0xa   : > { %s1034_s10 = scalar_select %p28_p1, %s937_s26, %s30_s8  }
   0xb   : > { %p39_p5 = por %p38_p2, %p37_p0  ;;  %p1036_p6 = por %p44_p4, %p43_p3 }
   0xc   : > { %p193_p7 = scmp.eq.s32.totalorder %s1018_s28, 1  ;;  %p199_p8 = scmp.eq.s32.totalorder %s758_s29, 1 }
   0xd   : > { %p791_p10 = scmp.lt.s32.totalorder %s941_s27, 2  ;;  %s237_s14 = sand.u32 1, %s937_s26  }
   0xe   : > { %p1043_p11 = por %p193_p7, %p37_p0  ;;  %p1047_p12 = por %p199_p8, %p43_p3 }
   0xf   : > { %s777_s15 = smul.u32 192, %s941_s27  ;;  %p1058_p13 = pnand %p791_p10, %p39_p5 }
  0x10   : > { %s1241_s12 = scalar_select %p1043_p11, 1, 0 }
  0x11   : > { %s1242_s13 = scalar_select %p1047_p12, 1, 0 }
  0x12   : > { %s776_s16 = smul.u32 12, %s237_s14  ;;  %s1056_s19 = scalar_lea.hbm %s1231_s0, %s777_s15 }
  0x13   : > { %s238_s23 = scalar_lea.sflag [#allocation4], %s237_s14  ;;  %s845_s29 = scalar_lea.hbm %s1056_s19, 192 }
  0x14   : > { %s241_s21 = scalar_lea.vmem [#allocation3], %s776_s16  ;;  %p846_p2 = scmp.ne.s32.totalorder %s1056_s19, %s845_s29 }
  0x15   : > { %s249_s22 = sshll.u32 %s241_s21, 4  ;;  %p847_p3 = pneg %p1058_p13  ;;  %s1063_s22 = int_to_ptr.vmem [resolvable:$true] %s249_s22 }
  0x16   : > { %s850_s15 = scalar_lea.hbm %s1231_s0, 384  ;;  %p851_p7 = scmp.lt.u32.totalorder %s1056_s19, %s1231_s0 }
  0x17   : > { %p848_p4 = pnand %p847_p3, %p846_p2  ;;  %p852_p8 = scmp.lt.u32.totalorder %s850_s15, %s845_s29 }
  0x18   : > { %p854_p9 = scmp.lt.u32.totalorder %s845_s29, %s1056_s19 }
  0x19   : > { %p849_p5 = pneg %p848_p4  ;;  %p853_p10 = por %p852_p8, %p851_p7 }
  0x1b   : > { %p855_p0 = por %p854_p9, %p853_p10 }
  0x1d   : > { %p856_p1 = pnand %p855_p0, %p849_p5 }
  0x1f   : > { %859 = shalt.err (!%p856_p1)
}
  0x20   : > { %s860_s14 = scalar_lea.vmem %s1063_s22, 192  ;;  %s943_s16 = smov [#allocation3]  }
  0x21   : > { %p861_p2 = scmp.ne.s32.totalorder %s1063_s22, %s860_s14  ;;  %s865_s21 = sshll.u32 %s943_s16, 4  ;;  %s866_s21 = int_to_ptr.vmem [resolvable:$false] %s865_s21 }
  0x22   : > { %s867_s8 = scalar_lea.vmem %s866_s21, 384  ;;  %p868_p11 = scmp.lt.s32.totalorder %s1063_s22, %s866_s21 }
  0x23   : > { %p863_p4 = pnand %p861_p2, %p847_p3  ;;  %p869_p7 = scmp.lt.s32.totalorder %s867_s8, %s860_s14 }
  0x25   : > { %p864_p12 = pneg %p863_p4  ;;  %p870_p8 = por %p869_p7, %p868_p11 }
  0x27   : > { %p871_p9 = pnand %p870_p8, %p864_p12 }
  0x29   : > { %874 = shalt.err (!%p871_p9)
}
  0x2a   : > { %786 = dma.hbm_to_vmem [thread:$0]  (!%p1058_p13), %s1056_s19, 192, %s1063_s22, %s238_s23  }
  0x2b   : > { %p1244_p0 = scmp.lt.s32.totalorder %s941_s27, 3  ;;  %p1245_p1 = scmp.ge.s32.totalorder %s941_s27, 1 }
  0x2d   : > { %p255_p3 = pnand %p1245_p1, %p1244_p0 }
  0x2e   : > { %s1096_s29 = sand.u32 (!%p255_p3), 1, %s933_s25  }
  0x2f   : > { %258 = sbr.rel (%p255_p3) target bundleno = 764 (0x2fc), region = 48  ;;  %s261_s15 = scalar_lea.sflag (!%p255_p3), [#allocation4], %s1096_s29 }
  0x30   : > { %s778_s9 = smul.u32 (!%p255_p3), 12, %s1096_s29 }
  0x32   : > { %s1100_s17 = scalar_lea.vmem (!%p255_p3), [#allocation3], %s778_s9 }
  0x36   : > { %920 = dma.done.wait (%p1036_p6), %s261_s15, 192  }
  0x37   : > { %922 = vsyncadd (%p1036_p6), %s261_s15, 4294967104  ;;  %v944_v0 = vmov 0   ;;  %v346_v1 = vld [vmem:[%s1232_s1] sm:$0xf]  ;;  %v295_v3 = vlaneseq  ;;  %v945_v21 = vmov 839922192  }
  0x38   : > { %836 = vset.pattern.permute.xlu0 %v944_v0  ;;  %613 = vmatprep.subr.bf16.mxu1 %v944_v0  ;;  %v361_v2 = vld [vmem:[%s1233_s2] sm:$0xf]  ;;  %v352_v22 = vunpack.c.l.s4 %v945_v21  ;;  %v344_v32 = vld [vmem:[%s1100_s17] sm:$0xff]  ;;  %v946_v34 = vmov 0.0   ;;  %s947_s11 = smov 127   ;;  %s949_s18 = smov 126  }
  0x39   : > { %349 = vperm.xlu0 %836, %v346_v1   ;;  %v296_v4 = vand.u32 127, %v295_v3  ;;  %v355_v27 = vshrl.u32 %v295_v3, 7  ;;  %v345_v33 = vld [vmem:[%s1100_s17 + $0x8] sm:$0xf]  ;;  %s950_s14 = smov 110   ;;  %s951_s16 = smov 109  }
  0x3a   : > { %v353_v26 = vunpack.c.0.s8 %v352_v22  ;;  %s952_s21 = smov 108   ;;  %s953_s8 = smov 92   ;;  %v1145_v57 = vld [vmem:[%s1234_s3] sm:$0xff] }
  0x3b   : > { %v297_v5 = vadd.s32 128, %v296_v4  ;;  %v299_v6 = vcvt.s32.f32 %v296_v4  ;;  %v298_v7 = vadd.s32 256, %v296_v4  ;;  %s954_s9 = smov 91   ;;  %v770_v58 = vcombine.high %v1145_v57, %v1145_v57  ;;  %s955_s19 = smov 90   ;;  %v556_v59 = vld [vmem:[%s1235_s4] sm:$0xff] }
  0x3c   : > { %v356_v29 = vsub.s32 %v353_v26, %v355_v27  ;;  %p1246_p11 = scmp.ne.s32.totalorder %s1241_s12, 0 }
  0x3d   : > { %364 = vperm.xlu0 %836, %v361_v2   ;;  %v300_v8 = vcvt.s32.f32 %v297_v5  ;;  %v302_v9 = vadd.f32 0.5, %v299_v6  ;;  %v301_v10 = vcvt.s32.f32 %v298_v7 }
  0x3f   : > { %v303_v11 = vadd.f32 0.5, %v300_v8  ;;  %v305_v12 = vmul.f32 0.055555556, %v302_v9  ;;  %v304_v14 = vadd.f32 0.5, %v301_v10 }
  0x41   : > { %v306_v13 = vmul.f32 0.055555556, %v303_v11  ;;  %v308_v15 = vfloor.f32 %v305_v12  ;;  %v307_v16 = vmul.f32 0.055555556, %v304_v14 }
  0x43   : > { %v309_v17 = vfloor.f32 %v306_v13  ;;  %v311_v18 = vmul.f32 18.0, %v308_v15  ;;  %v310_v19 = vfloor.f32 %v307_v16  ;;  %vm317_vm0 = vcmp.ge.f32.partialorder %v308_v15, 1.0 }
  0x44   : > { %vm320_vm1 = vcmp.le.f32.partialorder %v308_v15, 16.0 }
  0x45   : > { %v312_v20 = vmul.f32 18.0, %v309_v17  ;;  %v1114_v23 = vsub.f32 %v299_v6, %v311_v18  ;;  %v313_v24 = vmul.f32 18.0, %v310_v19  ;;  %vm318_vm2 = vcmp.ge.f32.partialorder %v309_v17, 1.0  ;;  %vm323_vm4 = vmand %vm317_vm0, %vm320_vm1 }
  0x46   : > { %vm321_vm3 = vcmp.le.f32.partialorder %v309_v17, 16.0  ;;  %vm319_vm8 = vcmp.ge.f32.partialorder %v310_v19, 1.0  ;;  %vm322_vm9 = vcmp.le.f32.partialorder %v310_v19, 16.0 }
  0x47   : > { %v1116_v25 = vsub.f32 %v300_v8, %v312_v20  ;;  %vm326_vm5 = vcmp.ge.f32.partialorder %v1114_v23, 1.0  ;;  %v1119_v28 = vsub.f32 %v301_v10, %v313_v24  ;;  %vm324_vm6 = vmand %vm318_vm2, %vm321_vm3  ;;  %vm332_vm11 = vcmp.le.f32.partialorder %v1114_v23, 16.0 }
  0x48   : > { %vm329_vm10 = vmand %vm323_vm4, %vm326_vm5  ;;  %vm385_vm5 = vcmask 1043456  }
  0x49   : > { %vm327_vm7 = vcmp.ge.f32.partialorder %v1116_v25, 1.0  ;;  %vm333_vm13 = vcmp.le.f32.partialorder %v1116_v25, 16.0  ;;  %vm325_vm14 = vmand %vm319_vm8, %vm322_vm9  ;;  %vm328_vm15 = vcmp.ge.f32.partialorder %v1119_v28, 1.0  ;;  %vm334_vm3 = vcmp.le.f32.partialorder %v1119_v28, 16.0 }
  0x4a   : > { %vm330_vm12 = vmand %vm324_vm6, %vm327_vm7  ;;  %vm394_vm6 = vcmask 261120   ;;  %vm948_vm7 = vmmov 1   ;;  %vm568_vm9 = vcmask 130048  }
  0x4b   : > { %vm335_vm0 = vmand %vm329_vm10, %vm332_vm11  ;;  %772 = vmatprep.mubr.msk.bf16.mxu1 %vm568_vm9, %v770_v58  ;;  %771 = vmatprep.mubr.msk.bf16.mxu0 %vm568_vm9, %v770_v58  ;;  %vm405_vm10 = vcmask 1039360   ;;  %vm420_vm11 = vcmask 1031168  }
  0x4c   : > { %vm336_vm1 = vmand %vm330_vm12, %vm333_vm13  ;;  %v763_v35 = vsel %vm335_vm0, 1.0, %v946_v34  ;;  %vm435_vm12 = vcmask 900096   ;;  %vm450_vm13 = vcmask 891904   ;;  %vm495_vm0 = vcmask 744448  }
  0x4d   : > { %vm331_vm2 = vmand %vm325_vm14, %vm328_vm15  ;;  %v764_v36 = vsel %vm336_vm1, 1.0, %v946_v34  ;;  %vm465_vm14 = vcmask 883712   ;;  %vm480_vm15 = vcmask 752640   ;;  %vm510_vm1 = vcmask 736256  }
  0x4e   : > { %vm337_vm4 = vmand %vm331_vm2, %vm334_vm3  ;;  %v378_v40 = vcombine.low %v763_v35, %v764_v36  ;;  %vm547_vm2 = vcmp.lt.f32.partialorder %v1114_v23, 16.0  ;;  %vm548_vm3 = vcmp.lt.f32.partialorder %v1116_v25, 16.0 }
  0x4f   : > { %v765_v42 = vsel %vm337_vm4, 1.0, %v946_v34  ;;  %vm839_vm8 = vmpackc.low %vm948_vm7, %vm385_vm5  ;;  %vm549_vm4 = vcmp.lt.f32.partialorder %v1119_v28, 16.0  ;;  %v767_v58 = vsel %vm548_vm3, 1.0, %v946_v34 }
  0xb8   : > { %v350_v30 = vpop.permute.xlu0 %349 }
  0xb9   : > { %v357_v31 = vrot.slane %v350_v30, %v356_v29 }
  0xbb   : > { %v359_v38 = vmul.f32 %v357_v31, %v344_v32  ;;  %v360_v39 = vmul.f32 %v357_v31, %v345_v33 }
  0xbc   : > { %v365_v37 = vpop.permute.xlu0 %364 }
  0xbd   : > { %v372_v41 = vrot.slane %v365_v37, %v356_v29 }
  0xbf   : > { %v374_v43 = vadd.f32 %v372_v41, %v359_v38  ;;  %v375_v44 = vadd.f32 %v372_v41, %v360_v39 }
  0xc1   : > { %v380_v45 = vmul.f32 %v378_v40, %v374_v43  ;;  %v381_v46 = vmul.f32 %v765_v42, %v375_v44 }
  0xc3   : > { %v383_v47 = vcombine.high %v380_v45, %v380_v45  ;;  %v386_v48 = vsel %vm385_vm5, %v380_v45, 0.0  ;;  %v388_v49 = vsel %vm385_vm5, %v381_v46, 0.0  ;;  %v843_v55 = vpack.c.bf16 %v946_v34, %v380_v45 }
  0xc4   : > { %v389_v50 = vpack.c.bf16 %v946_v34, %v386_v48  ;;  %v391_v51 = vpack.c.bf16 %v946_v34, %v388_v49  ;;  %v769_v48 = vcombine.low %v1145_v57, %v1145_v57 }
  0xc5   : > { %v387_v52 = vsel %vm385_vm5, %v383_v47, 0.0  ;;  %v840_v54 = vpack.c.bf16 %v946_v34, %v383_v47  ;;  %vm667_vm5 = vcmask 80896  }
  0xc6   : > { %v390_v53 = vpack.c.bf16 %v946_v34, %v387_v52  ;;  %403 = vrot.lane.b32.xlu1 %v391_v51, %s947_s11  ;;  %399 = vrot.lane.b32.xlu0 %v389_v50, %s947_s11  ;;  %395 = vst.msk [vmem:[#allocation2 + $0x10] sm:$0xff] %vm394_vm6, %v391_v51 }
  0xc7   : > { %841 = vmatprep.subr.msk.bf16.mxu0 %vm839_vm8, %v840_v54  ;;  %v766_v54 = vsel %vm547_vm2, 1.0, %v946_v34 }
  0xc8   : > { %844 = vmatpush1.bf16.msk.msra.mxu0 %vm839_vm8, %v843_v55 }
  0xca   : > { %414 = vrot.lane.b32.xlu1 %v389_v50, %s949_s18  ;;  %418 = vrot.lane.b32.xlu0 %v391_v51, %s949_s18 }
  0xcd   : > { %v522_v56 = vld [vmem:[#allocation2 + $0x10] sm:$0xff] }
  0xce   : > { %614 = vmatpush1.bf16.msra.mxu1 %v522_v56  ;;  %433 = vrot.lane.b32.xlu1 %v391_v51, %s950_s14 }
  0xcf   : > { %429 = vrot.lane.b32.xlu0 %v389_v50, %s950_s14  ;;  %615 = vmatprep.subr.bf16.mxu1 %v944_v0 }
  0xd2   : > { %444 = vrot.lane.b32.xlu1 %v389_v50, %s951_s16 }
  0xd3   : > { %448 = vrot.lane.b32.xlu0 %v391_v51, %s951_s16 }
  0xd6   : > { %401 = vrot.lane.b32.xlu1 %v390_v53, %s947_s11 }
  0xd7   : > { %459 = vrot.lane.b32.xlu0 %v389_v50, %s952_s21 }
  0xda   : > { %416 = vrot.lane.b32.xlu1 %v390_v53, %s949_s18 }
  0xdb   : > { %431 = vrot.lane.b32.xlu0 %v390_v53, %s950_s14 }
  0xde   : > { %463 = vrot.lane.b32.xlu1 %v391_v51, %s952_s21 }
  0xdf   : > { %478 = vrot.lane.b32.xlu0 %v391_v51, %s953_s8 }
  0xe2   : > { %446 = vrot.lane.b32.xlu1 %v390_v53, %s951_s16  ;;  %s773_s16 = sshll.u32 %s1018_s28, 4  ;;  %s956_s28 = smov [#allocation6]  }
  0xe3   : > { %461 = vrot.lane.b32.xlu0 %v390_v53, %s952_s21  ;;  %s293_s21 = scalar_lea.vmem [#allocation6], %s1096_s29  ;;  %s1187_s17 = scalar_lea.hbm %s1238_s7, %s773_s16 }
  0xe4   : > { %s879_s22 = sshll.u32 %s956_s28, 4  ;;  %s880_s22 = int_to_ptr.vmem [resolvable:$false] %s879_s22 }
  0xe5   : > { %s881_s23 = scalar_lea.vmem %s880_s22, 32 }
  0xe6   : > { %474 = vrot.lane.b32.xlu1 %v389_v50, %s953_s8 }
  0xe7   : > { %489 = vrot.lane.b32.xlu0 %v389_v50, %s954_s9 }
  0xea   : > { %476 = vrot.lane.b32.xlu1 %v390_v53, %s953_s8  ;;  %s692_s8 = sshll.u32 %s293_s21, 4  ;;  %s1189_s8 = int_to_ptr.vmem [resolvable:$true] %s692_s8 }
  0xeb   : > { %491 = vrot.lane.b32.xlu0 %v390_v53, %s954_s9  ;;  %s875_s20 = scalar_lea.vmem %s1189_s8, 16  ;;  %p882_p5 = scmp.lt.s32.totalorder %s1189_s8, %s880_s22 }
  0xec   : > { %p876_p6 = scmp.ne.s32.totalorder %s1189_s8, %s875_s20  ;;  %p883_p10 = scmp.lt.s32.totalorder %s881_s23, %s875_s20 }
  0xee   : > { %493 = vrot.lane.b32.xlu1 %v391_v51, %s954_s9  ;;  %p877_p12 = pnand %p876_p6, %p1246_p11  ;;  %p884_p2 = por %p883_p10, %p882_p5 }
  0xef   : > { %508 = vrot.lane.b32.xlu0 %v391_v51, %s955_s19 }
  0xf0   : > { %p878_p13 = pneg %p877_p12 }
  0xf2   : > { %506 = vrot.lane.b32.xlu1 %v390_v53, %s955_s19  ;;  %p885_p4 = pnand %p884_p2, %p878_p13 }
  0xf3   : > { %559 = vperm.xlu0 %836, %v556_v59  }
  0xf6   : > { %504 = vrot.lane.b32.xlu1 %v389_v50, %s955_s19  ;;  %s680_s19 = scalar_lea.sflag [#allocation5], %s1096_s29 }
 0x138   : > { %v404_v60 = vpop.permute.xlu1 %403  ;;  %v400_v61 = vpop.permute.xlu0 %399 }
 0x139   : > { %413 = vst.msk [vmem:[#allocation2 + $0x28] sm:$0xff] %vm394_vm6, %v404_v60 }
 0x13c   : > { %v415_v62 = vpop.permute.xlu1 %414  ;;  %v419_v63 = vpop.permute.xlu0 %418 }
 0x13d   : > { %428 = vst.msk [vmem:[#allocation2 + $0x40] sm:$0xff] %vm394_vm6, %v419_v63 }
 0x140   : > { %v434_v1 = vpop.permute.xlu1 %433  ;;  %v525_v2 = vld [vmem:[#allocation2 + $0x28] sm:$0xff] }
 0x141   : > { %443 = vst.msk [vmem:[#allocation2 + $0x58] sm:$0xff] %vm394_vm6, %v434_v1  ;;  %v430_v3 = vpop.permute.xlu0 %429  ;;  %616 = vmatpush1.bf16.msra.mxu1 %v525_v2 }
 0x142   : > { %617 = vmatprep.subr.bf16.mxu1 %v944_v0 }
 0x144   : > { %v445_v4 = vpop.permute.xlu1 %444  ;;  %v528_v5 = vld [vmem:[#allocation2 + $0x40] sm:$0xff] }
 0x145   : > { %v449_v6 = vpop.permute.xlu0 %448  ;;  %618 = vmatpush1.bf16.msra.mxu1 %v528_v5 }
 0x146   : > { %458 = vst.msk [vmem:[#allocation2 + $0x70] sm:$0xff] %vm394_vm6, %v449_v6  ;;  %619 = vmatprep.subr.bf16.mxu1 %v944_v0 }
 0x148   : > { %v402_v7 = vpop.permute.xlu1 %401  ;;  %v531_v8 = vld [vmem:[#allocation2 + $0x58] sm:$0xff] }
 0x149   : > { %v460_v9 = vpop.permute.xlu0 %459  ;;  %v406_v10 = vsel %vm405_vm10, %v400_v61, %v402_v7  ;;  %v407_v11 = vsel %vm405_vm10, %v402_v7, %v404_v60  ;;  %620 = vmatpush1.bf16.msra.mxu1 %v531_v8  ;;  %v665_v7 = vld [vmem:[%s1236_s5] sm:$0xff] }
 0x14a   : > { %621 = vmatprep.subr.bf16.mxu1 %v944_v0  ;;  %574 = vmatprep.subr.bf16.mxu0 %v407_v11 }
 0x14b   : > { %575 = vmatpush1.bf16.msra.mxu0 %v406_v10 }
 0x14c   : > { %v417_v12 = vpop.permute.xlu1 %416 }
 0x14d   : > { %v432_v13 = vpop.permute.xlu0 %431  ;;  %v421_v14 = vsel %vm420_vm11, %v415_v62, %v417_v12  ;;  %v422_v15 = vsel %vm420_vm11, %v417_v12, %v419_v63  ;;  %v534_v16 = vld [vmem:[#allocation2 + $0x70] sm:$0xff]  ;;  %v768_v62 = vsel %vm549_vm4, 1.0, %v946_v34 }
 0x14e   : > { %v436_v17 = vsel %vm435_vm12, %v430_v3, %v432_v13  ;;  %v437_v18 = vsel %vm435_vm12, %v432_v13, %v434_v1  ;;  %622 = vmatpush1.bf16.msra.mxu1 %v534_v16  ;;  %576 = vmatprep.subr.bf16.mxu0 %v422_v15  ;;  %v675_v16 = vld [vmem:[%s1237_s6] sm:$0x1] }
 0x14f   : > { %577 = vmatpush1.bf16.msra.mxu0 %v421_v14  ;;  %623 = vmatprep.subr.bf16.mxu1 %v944_v0 }
 0x150   : > { %v464_v19 = vpop.permute.xlu1 %463  ;;  %578 = vmatprep.subr.bf16.mxu0 %v437_v18 }
 0x151   : > { %v479_v20 = vpop.permute.xlu0 %478  ;;  %473 = vst.msk [vmem:[#allocation2 + $0x88] sm:$0xff] %vm394_vm6, %v464_v19 }
 0x152   : > { %488 = vst.msk [vmem:[#allocation2 + $0xa0] sm:$0xff] %vm394_vm6, %v479_v20 }
 0x153   : > { %579 = vmatpush1.bf16.msra.mxu0 %v436_v17 }
 0x154   : > { %v447_v21 = vpop.permute.xlu1 %446 }
 0x155   : > { %v462_v22 = vpop.permute.xlu0 %461  ;;  %v451_v24 = vsel %vm450_vm13, %v445_v4, %v447_v21  ;;  %v452_v26 = vsel %vm450_vm13, %v447_v21, %v449_v6 }
 0x156   : > { %v466_v27 = vsel %vm465_vm14, %v460_v9, %v462_v22  ;;  %v467_v29 = vsel %vm465_vm14, %v462_v22, %v464_v19  ;;  %580 = vmatprep.subr.bf16.mxu0 %v452_v26 }
 0x157   : > { %581 = vmatpush1.bf16.msra.mxu0 %v451_v24 }
 0x158   : > { %v475_v30 = vpop.permute.xlu1 %474  ;;  %v537_v31 = vld [vmem:[#allocation2 + $0x88] sm:$0xff]  ;;  %582 = vmatprep.subr.bf16.mxu0 %v467_v29 }
 0x159   : > { %v490_v32 = vpop.permute.xlu0 %489  ;;  %624 = vmatpush1.bf16.msra.mxu1 %v537_v31  ;;  %v540_v35 = vld [vmem:[#allocation2 + $0xa0] sm:$0xff] }
 0x15a   : > { %625 = vmatprep.subr.bf16.mxu1 %v944_v0 }
 0x15b   : > { %583 = vmatpush1.bf16.msra.mxu0 %v466_v27 }
 0x15c   : > { %v477_v33 = vpop.permute.xlu1 %476 }
 0x15d   : > { %v492_v36 = vpop.permute.xlu0 %491  ;;  %v481_v37 = vsel %vm480_vm15, %v475_v30, %v477_v33  ;;  %v482_v38 = vsel %vm480_vm15, %v477_v33, %v479_v20  ;;  %626 = vmatpush1.bf16.msra.mxu1 %v540_v35 }
 0x15e   : > { %v496_v39 = vsel %vm495_vm0, %v490_v32, %v492_v36  ;;  %584 = vmatprep.subr.bf16.mxu0 %v482_v38  ;;  %627 = vmatprep.subr.bf16.mxu1 %v944_v0 }
 0x15f   : > { %585 = vmatpush1.bf16.msra.mxu0 %v481_v37 }
 0x160   : > { %v494_v40 = vpop.permute.xlu1 %493 }
 0x161   : > { %v509_v41 = vpop.permute.xlu0 %508  ;;  %v497_v42 = vsel %vm495_vm0, %v492_v36, %v494_v40  ;;  %503 = vst.msk [vmem:[#allocation2 + $0xb8] sm:$0xff] %vm394_vm6, %v494_v40 }
 0x162   : > { %518 = vst.msk [vmem:[#allocation2 + $0xd0] sm:$0xff] %vm394_vm6, %v509_v41  ;;  %586 = vmatprep.subr.bf16.mxu0 %v497_v42 }
 0x163   : > { %587 = vmatpush1.bf16.msra.mxu0 %v496_v39 }
 0x164   : > { %v507_v43 = vpop.permute.xlu1 %506 }
 0x165   : > { %v512_v44 = vsel %vm510_vm1, %v507_v43, %v509_v41 }
 0x166   : > { %588 = vmatprep.subr.bf16.mxu0 %v512_v44 }
 0x168   : > { %v505_v45 = vpop.permute.xlu1 %504  ;;  %v543_v46 = vld [vmem:[#allocation2 + $0xb8] sm:$0xff] }
 0x169   : > { %v511_v47 = vsel %vm510_vm1, %v505_v45, %v507_v43  ;;  %628 = vmatpush1.bf16.msra.mxu1 %v543_v46  ;;  %v546_v49 = vld [vmem:[#allocation2 + $0xd0] sm:$0xff] }
 0x16a   : > { %629 = vmatprep.subr.bf16.mxu1 %v944_v0  ;;  %589 = vmatpush1.bf16.msra.mxu0 %v511_v47 }
 0x16d   : > { %630 = vmatpush1.bf16.msra.mxu1 %v546_v49  ;;  %605 = vmatmul.mubr.bf16.vlgmr.msra.gmra.mrb[0].mxu0 %v769_v48 }
 0x170   : > { %646 = vmatmul.mubr.bf16.vlgmr.msra.gmra.mrb[0].mxu1 %v769_v48 }
 0x172   : > { %v560_v50 = vpop.permute.xlu0 %559 }
 0x240   : > { %v606_v51 = vpop.f32.mrb[0].mxu0 }
 0x241   : > { %v607_v52 = vadd.f32 %v606_v51, %v560_v50  ;;  %v608_v53 = vpop.f32.mrb[1].mxu0 }
 0x242   : > { %v609_v55 = vadd.f32 %v608_v53, %v560_v50  ;;  %v610_v56 = vpop.f32.mrb[2].mxu0 }
 0x243   : > { %v647_v0 = vpop.f32.mrb[0].mxu1  ;;  %v653_v57 = vmax.f32 %v607_v52, 0.0  ;;  %v611_v59 = vpop.f32.mrb[3].mxu0 }
 0x244   : > { %v648_v60 = vadd.f32 %v647_v0, %v560_v50  ;;  %v649_v61 = vpop.f32.mrb[1].mxu1  ;;  %v654_v23 = vmax.f32 %v609_v55, 0.0 }
 0x245   : > { %v656_v63 = vmul.f32 %v766_v54, %v653_v57  ;;  %v650_v25 = vpop.f32.mrb[2].mxu1 }
 0x246   : > { %v655_v1 = vmax.f32 %v648_v60, 0.0  ;;  %v657_v2 = vmul.f32 %v767_v58, %v654_v23  ;;  %v651_v3 = vpop.f32.mrb[3].mxu1 }
 0x248   : > { %v658_v28 = vmul.f32 %v768_v62, %v655_v1  ;;  %v659_v4 = vadd.f32 %v657_v2, %v656_v63 }
 0x24a   : > { %v660_v5 = vsel %vm394_vm6, %v658_v28, 0.0  ;;  %vm677_vm6 = vcmask 73728  }
 0x24b   : > { %v661_v6 = vadd.f32 %v660_v5, %v659_v4 }
 0x24d   : > { %662 = vadd.xlane.f32.xlu1 %v661_v6 }
 0x2da   : > { %v663_v8 = vpop.xlane.xlu1 %662 }
 0x2db   : > { %v664_v9 = vmul.f32 0.00390625, %v663_v8 }
 0x2dd   : > { %v666_v34 = vmul.f32 %v665_v7, %v664_v9 }
 0x2df   : > { %v668_v10 = vsel %vm667_vm5, %v666_v34, 0.0 }
 0x2e0   : > { %v669_v11 = vrot.slane %v668_v10, 4 }
 0x2e2   : > { %v670_v12 = vadd.f32 %v669_v11, %v668_v10 }
 0x2e4   : > { %v671_v13 = vrot.slane %v670_v12, 2 }
 0x2e6   : > { %v672_v14 = vadd.f32 %v671_v13, %v670_v12 }
 0x2e8   : > { %v673_v15 = vrot.slane %v672_v14, 1 }
 0x2ea   : > { %v674_v17 = vadd.f32 %v673_v15, %v672_v14 }
 0x2ec   : > { %v676_v18 = vadd.f32 %v675_v16, %v674_v17 }
 0x2ee   : > { %678 = vst.msk [vmem:[%s293_s21] sm:$0x1] %vm677_vm6, %v676_v18 }
 0x2ef   : > { %888 = shalt.err (!%p885_p4)
}
 0x2f0   : > { %s889_s29 = scalar_lea.hbm %s1187_s17, 16  ;;  %s893_s14 = scalar_lea.hbm %s1238_s7, 32 }
 0x2f1   : > { %p890_p7 = scmp.ne.s32.totalorder %s1187_s17, %s889_s29  ;;  %p894_p0 = scmp.lt.u32.totalorder %s1187_s17, %s1238_s7 }
 0x2f2   : > { %p895_p1 = scmp.lt.u32.totalorder %s893_s14, %s889_s29  ;;  %p897_p6 = scmp.lt.u32.totalorder %s889_s29, %s1187_s17 }
 0x2f3   : > { %p891_p8 = pnand %p890_p7, %p1246_p11 }
 0x2f4   : > { %p896_p3 = por %p895_p1, %p894_p0 }
 0x2f5   : > { %p892_p9 = pneg %p891_p8 }
 0x2f6   : > { %p898_p12 = por %p897_p6, %p896_p3 }
 0x2f8   : > { %p899_p13 = pnand %p898_p12, %p892_p9 }
 0x2fa   : > { %902 = shalt.err (!%p899_p13)
}
 0x2fb   : > { %781 = dma.vmem_to_hbm [thread:$0]  (%p1246_p11), %s1189_s8, 16, %s1187_s17, %s680_s19  }
 0x2fc PF: > { %s704_s9 = sand.u32 1, %s929_s24   ;;  %p1247_p5 = scmp.ne.s32.totalorder %s1242_s13, 0 }
 0x2fd   : > { %p1248_p10 = scmp.ge.s32.totalorder %s941_s27, 2  ;;  %s705_s15 = scalar_lea.sflag [#allocation5], %s704_s9 }
 0x2ff   : > { %p788_p2 = pnand %p1248_p10, %p1247_p5 }
 0x301   : > { %924 = dma.done.wait (!%p788_p2), %s705_s15, 16  }
 0x302   : > { %926 = vsyncadd (!%p788_p2), %s705_s15, 4294967280  ;;  %p20_p4 = scmp.ge.s32.totalorder %s1022_s30, 4   ;;  %s1249_s24 = smov %s933_s25 }
 0x303   : > { %s1250_s25 = smov %s937_s26  ;;  %s1251_s26 = smov %s1034_s10 }
 0x304   : > { %s1252_s27 = smov %s1022_s30  ;;  %22 = sbr.rel (!%p20_p4) target bundleno = 5 (0x5), region = 93 }
 0x30b   :  { %709 = vsyncpa [#allocation4], 1 }
 0x30c   :  { %711 = vsyncpa [#allocation4 + $0x1], 1 }
 0x30d   :  { %712 = vsyncpa [#allocation5], 1 }
 0x30e   :  { %714 = vsyncpa [#allocation5 + $0x1], 1 }

</bundles_post_ra>
